<compile_context>
chip_gen: v6e
topology: v6e:2x2x1
jax: 0.10.0
libtpu: 0.0.40
codegen_flags: <defaults>
</compile_context>

<pallas_src>
import jax
import jax.numpy as jnp
from jax.experimental import pallas as pl
from jax.experimental.pallas import tpu as pltpu


# ---------------------------------------------------------------------------
# Fused kernel + wrapper
# ---------------------------------------------------------------------------
def lstm_nll_forward(embs, lengths, w_ih_t, w_hh_t, b_gates, w_out_t, b_out,
                     t_onehot):
    """embs: (T, B, E) f32; lengths: (B,) int32; weights pre-transposed.

    Returns (scalar mean NLL loss, final hidden state h (B, H))."""
    T, B, E = embs.shape
    H = w_hh_t.shape[0]
    G = 4 * H

    # Free row-major view; lets the kernel do ONE big input-projection matmul.
    x_flat = embs.reshape(T * B, E)
    lens2d = lengths.reshape(B, 1).astype(jnp.int32)

    def kernel(x_ref, len_ref, wih_ref, whh_ref, bg_ref,
               wout_ref, bout_ref, onehot_ref,
               loss_ref, h_out_ref, xw_sc):
        # ---- hoisted input projection: (T*B, E) @ (E, 4H) + b, done once ----
        xw_sc[...] = (jnp.dot(x_ref[...], wih_ref[...],
                              preferred_element_type=jnp.float32)
                      + bg_ref[...])

        whh = whh_ref[...]          # (H, 4H), resident in vregs across the loop
        lens = len_ref[...]         # (B, 1) int32

        def step(t, carry):
            h, c = carry
            base = pl.multiple_of(t * B, B)
            gx = xw_sc[pl.ds(base, B), :]                        # (B, 4H)
            gates = gx + jnp.dot(h, whh,
                                 preferred_element_type=jnp.float32)
            # full-tile EUP passes, then cheap lane slices of the results
            sig = jax.nn.sigmoid(gates)                          # (B, 4H)
            tnh = jnp.tanh(gates)                                # (B, 4H)
            i_g = sig[:, 0 * H:1 * H]
            f_g = sig[:, 1 * H:2 * H]
            g_g = tnh[:, 2 * H:3 * H]
            o_g = sig[:, 3 * H:4 * H]
            c_new = f_g * c + i_g * g_g
            h_new = o_g * jnp.tanh(c_new)
            keep = t < lens                                      # (B, 1) bool
            h = jnp.where(keep, h_new, h)
            c = jnp.where(keep, c_new, c)
            return (h, c)

        h0 = jnp.zeros((B, H), jnp.float32)
        c0 = jnp.zeros((B, H), jnp.float32)
        h, _ = jax.lax.fori_loop(0, T, step, (h0, c0), unroll=True)

        h_out_ref[...] = h

        # ---- fused head: Linear -> log_softmax(dim=1) -> NLLLoss(mean) ----
        logits = (jnp.dot(h, wout_ref[...],
                          preferred_element_type=jnp.float32)
                  + bout_ref[...])                               # (B, C)
        mx = jnp.max(logits, axis=1, keepdims=True)
        z = logits - mx
        lse = jnp.log(jnp.sum(jnp.exp(z), axis=1, keepdims=True))
        logp = z - lse
        picked = jnp.sum(logp * onehot_ref[...], axis=1, keepdims=True)  # (B,1)
        loss_ref[...] = -jnp.mean(picked, keepdims=True)         # (1, 1)

    loss, h_final = pl.pallas_call(
        kernel,
        out_shape=(jax.ShapeDtypeStruct((1, 1), jnp.float32),
                   jax.ShapeDtypeStruct((B, H), jnp.float32)),
        scratch_shapes=[pltpu.VMEM((T * B, G), jnp.float32)],
    )(x_flat, lens2d, w_ih_t, w_hh_t, b_gates, w_out_t, b_out, t_onehot)

    return loss[0, 0], h_final


# ---------------------------------------------------------------------------
# Pure-JAX reference (for correctness check)
# ---------------------------------------------------------------------------
def reference(embs, lengths, w_ih_t, w_hh_t, b_gates, w_out_t, b_out, t_onehot):
    T, B, E = embs.shape
    H = w_hh_t.shape[0]
    time_ix = jnp.arange(T)[:, None]
    mask = (time_ix < lengths[None, :]).astype(jnp.float32)[..., None]  # (T,B,1)

    def step(carry, inp):
        h, c = carry
        x, m = inp
        gates = x @ w_ih_t + h @ w_hh_t + b_gates
        i_g = jax.nn.sigmoid(gates[:, 0 * H:1 * H])
        f_g = jax.nn.sigmoid(gates[:, 1 * H:2 * H])
        g_g = jnp.tanh(gates[:, 2 * H:3 * H])
        o_g = jax.nn.sigmoid(gates[:, 3 * H:4 * H])
        c_new = f_g * c + i_g * g_g
        h_new = o_g * jnp.tanh(c_new)
        keep = m > 0.0
        h = jnp.where(keep, h_new, h)
        c = jnp.where(keep, c_new, c)
        return (h, c), None

    h0 = jnp.zeros((B, H), jnp.float32)
    c0 = jnp.zeros((B, H), jnp.float32)
    (h, _), _ = jax.lax.scan(step, (h0, c0), (embs, mask))
    logits = h @ w_out_t + b_out
    logp = jax.nn.log_softmax(logits, axis=1)
    picked = jnp.sum(logp * t_onehot, axis=1)
    return -jnp.mean(picked), h


if __name__ == "__main__":
    vocab_size, embed_size, hidden_size, categories = 50, 16, 32, 8
    seq_len, batch = 8, 4

    key = jax.random.PRNGKey(0)
    keys = jax.random.split(key, 12)

    # --- deterministic parameter init (shapes from the module __init__) ---
    embed_w = jax.random.normal(keys[0], (vocab_size, embed_size), jnp.float32)
    k = 1.0 / jnp.sqrt(hidden_size)
    w_ih = jax.random.uniform(keys[1], (4 * hidden_size, embed_size), jnp.float32, -k, k)
    w_hh = jax.random.uniform(keys[2], (4 * hidden_size, hidden_size), jnp.float32, -k, k)
    b_ih = jax.random.uniform(keys[3], (4 * hidden_size,), jnp.float32, -k, k)
    b_hh = jax.random.uniform(keys[4], (4 * hidden_size,), jnp.float32, -k, k)
    w_out = jax.random.uniform(keys[5], (categories, hidden_size), jnp.float32, -k, k)
    b_out = jax.random.uniform(keys[6], (categories,), jnp.float32, -k, k)

    # --- inputs: xs (T, B) token ids, lengths sorted descending, targets t ---
    xs = jax.random.randint(keys[7], (seq_len, batch), 0, vocab_size)
    lengths = jnp.array([8, 7, 5, 3], jnp.int32)      # sorted, as pack_padded requires
    targets = jax.random.randint(keys[8], (batch,), 0, categories)

    # --- glue: embedding gather + dropout(p=0.1, training) ---
    # TODO(synk): nn.Embedding lookup and torch's dropout RNG are done as JAX
    # glue (a gather and a bernoulli mask); they have no meaningful Pallas win
    # at these shapes.
    embs = embed_w[xs]                                 # (T, B, E)
    keep_mask = jax.random.bernoulli(keys[9], 0.9, embs.shape)
    embs = jnp.where(keep_mask, embs / 0.9, 0.0).astype(jnp.float32)

    # transposed params for the kernel
    w_ih_t = w_ih.T                                    # (E, 4H)
    w_hh_t = w_hh.T                                    # (H, 4H)
    b_gates = (b_ih + b_hh).reshape(1, 4 * hidden_size)
    w_out_t = w_out.T                                  # (H, C)
    b_out2 = b_out.reshape(1, categories)
    t_onehot = jax.nn.one_hot(targets, categories, dtype=jnp.float32)

    loss, h_final = lstm_nll_forward(embs, lengths, w_ih_t, w_hh_t, b_gates,
                                     w_out_t, b_out2, t_onehot)
    loss = jax.block_until_ready(loss)

    loss_ref, h_ref = reference(embs, lengths, w_ih_t, w_hh_t, b_gates,
                                w_out_t, b_out2, t_onehot)
    assert jnp.allclose(h_final, h_ref, atol=1e-5, rtol=1e-5)
    assert jnp.allclose(loss, loss_ref, atol=1e-5, rtol=1e-5)

    print("KERNEL_OK")
</pallas_src>

<mosaic_0001>
module attributes {stable_mosaic.version = 11 : i64} {
  func.func @kernel(%arg0: memref<32x16xf32, #tpu.memory_space<vmem>>, %arg1: memref<4x1xi32, #tpu.memory_space<vmem>>, %arg2: memref<16x128xf32, #tpu.memory_space<vmem>>, %arg3: memref<32x128xf32, #tpu.memory_space<vmem>>, %arg4: memref<1x128xf32, #tpu.memory_space<vmem>>, %arg5: memref<32x8xf32, #tpu.memory_space<vmem>>, %arg6: memref<1x8xf32, #tpu.memory_space<vmem>>, %arg7: memref<4x8xf32, #tpu.memory_space<vmem>>, %arg8: memref<1x1xf32, #tpu.memory_space<vmem>>, %arg9: memref<4x32xf32, #tpu.memory_space<vmem>>, %arg10: memref<32x128xf32, #tpu.memory_space<vmem>>) attributes {dimension_semantics = [], scalar_prefetch = 0 : i64, scratch_operands = 1 : i64, tpu.core_type = #tpu.core_type<tc>} {
    %c0 = arith.constant 0 : index
    %c0_0 = arith.constant 0 : index
    %0 = vector.load %arg0[%c0, %c0_0] : memref<32x16xf32, #tpu.memory_space<vmem>>, vector<32x16xf32>
    %c0_1 = arith.constant 0 : index
    %c0_2 = arith.constant 0 : index
    %1 = vector.load %arg2[%c0_1, %c0_2] : memref<16x128xf32, #tpu.memory_space<vmem>>, vector<16x128xf32>
    %cst = arith.constant dense<0.000000e+00> : vector<32x128xf32>
    %2 = tpu.matmul %0, %1, %cst {dimension_numbers = #tpu.dot_dimension_numbers<[1], [0], [0], [1], [0, 0, 1, 1], [], []>} : vector<32x16xf32>, vector<16x128xf32>, vector<32x128xf32> -> vector<32x128xf32>
    %c0_3 = arith.constant 0 : index
    %c0_4 = arith.constant 0 : index
    %3 = vector.load %arg4[%c0_3, %c0_4] : memref<1x128xf32, #tpu.memory_space<vmem>>, vector<1x128xf32>
    %4 = vector.broadcast %3 : vector<1x128xf32> to vector<32x128xf32>
    %5 = arith.addf %2, %4 : vector<32x128xf32>
    %c0_5 = arith.constant 0 : index
    %c0_6 = arith.constant 0 : index
    %6 = vector.load %arg10[%c0_5, %c0_6] : memref<32x128xf32, #tpu.memory_space<vmem>>, vector<32x128xf32>
    tpu.vector_store %arg10[%c0_5, %c0_6], %5 {strides = array<i32>} : memref<32x128xf32, #tpu.memory_space<vmem>>, vector<32x128xf32>,
    %c0_7 = arith.constant 0 : index
    %c0_8 = arith.constant 0 : index
    %7 = vector.load %arg3[%c0_7, %c0_8] : memref<32x128xf32, #tpu.memory_space<vmem>>, vector<32x128xf32>
    %c0_9 = arith.constant 0 : index
    %c0_10 = arith.constant 0 : index
    %8 = vector.load %arg1[%c0_9, %c0_10] : memref<4x1xi32, #tpu.memory_space<vmem>>, vector<4x1xi32>
    %cst_11 = arith.constant 0.000000e+00 : f32
    %9 = vector.broadcast %cst_11 : f32 to vector<4x32xf32>
    %cst_12 = arith.constant 0.000000e+00 : f32
    %10 = vector.broadcast %cst_12 : f32 to vector<4x32xf32>
    %c0_i32 = arith.constant 0 : i32
    %c4_i32 = arith.constant 4 : i32
    %11 = arith.muli %c0_i32, %c4_i32 : i32
    %12 = tpu.assume_multiple %11, 4 : i32
    %13 = arith.index_cast %12 : i32 to index
    %c0_13 = arith.constant 0 : index
    %14 = vector.load %arg10[%13, %c0_13] : memref<32x128xf32, #tpu.memory_space<vmem>>, vector<4x128xf32>
    %cst_14 = arith.constant dense<0.000000e+00> : vector<4x128xf32>
    %15 = tpu.matmul %9, %7, %cst_14 {dimension_numbers = #tpu.dot_dimension_numbers<[1], [0], [0], [1], [0, 0, 1, 1], [], []>} : vector<4x32xf32>, vector<32x128xf32>, vector<4x128xf32> -> vector<4x128xf32>
    %16 = arith.addf %14, %15 : vector<4x128xf32>
    %17 = arith.negf %16 : vector<4x128xf32>
    %18 = math.exp %17 : vector<4x128xf32>
    %cst_15 = arith.constant 1.000000e+00 : f32
    %19 = vector.broadcast %cst_15 : f32 to vector<4x128xf32>
    %20 = arith.addf %19, %18 : vector<4x128xf32>
    %21 = arith.divf %19, %20 : vector<4x128xf32>
    %22 = math.tanh %16 : vector<4x128xf32>
    %23 = vector.extract_strided_slice %21 {offsets = [0, 0], sizes = [4, 32], strides = [1, 1]} : vector<4x128xf32> to vector<4x32xf32>
    %24 = vector.extract_strided_slice %21 {offsets = [0, 32], sizes = [4, 32], strides = [1, 1]} : vector<4x128xf32> to vector<4x32xf32>
    %25 = vector.extract_strided_slice %22 {offsets = [0, 64], sizes = [4, 32], strides = [1, 1]} : vector<4x128xf32> to vector<4x32xf32>
    %26 = vector.extract_strided_slice %21 {offsets = [0, 96], sizes = [4, 32], strides = [1, 1]} : vector<4x128xf32> to vector<4x32xf32>
    %27 = arith.mulf %24, %10 : vector<4x32xf32>
    %28 = arith.mulf %23, %25 : vector<4x32xf32>
    %29 = arith.addf %27, %28 : vector<4x32xf32>
    %30 = math.tanh %29 : vector<4x32xf32>
    %31 = arith.mulf %26, %30 : vector<4x32xf32>
    %32 = vector.broadcast %c0_i32 : i32 to vector<4x1xi32>
    %33 = arith.cmpi slt, %32, %8 : vector<4x1xi32>
    %34 = vector.shape_cast %33 : vector<4x1xi1> to vector<4x1xi1>
    %35 = vector.broadcast %34 : vector<4x1xi1> to vector<4x32xi1>
    %36 = arith.select %35, %31, %9 : vector<4x32xi1>, vector<4x32xf32>
    %37 = vector.shape_cast %33 : vector<4x1xi1> to vector<4x1xi1>
    %38 = vector.broadcast %37 : vector<4x1xi1> to vector<4x32xi1>
    %39 = arith.select %38, %29, %10 : vector<4x32xi1>, vector<4x32xf32>
    %c1_i32 = arith.constant 1 : i32
    %c4_i32_16 = arith.constant 4 : i32
    %40 = arith.muli %c1_i32, %c4_i32_16 : i32
    %41 = tpu.assume_multiple %40, 4 : i32
    %42 = arith.index_cast %41 : i32 to index
    %c0_17 = arith.constant 0 : index
    %43 = vector.load %arg10[%42, %c0_17] : memref<32x128xf32, #tpu.memory_space<vmem>>, vector<4x128xf32>
    %cst_18 = arith.constant dense<0.000000e+00> : vector<4x128xf32>
    %44 = tpu.matmul %36, %7, %cst_18 {dimension_numbers = #tpu.dot_dimension_numbers<[1], [0], [0], [1], [0, 0, 1, 1], [], []>} : vector<4x32xf32>, vector<32x128xf32>, vector<4x128xf32> -> vector<4x128xf32>
    %45 = arith.addf %43, %44 : vector<4x128xf32>
    %46 = arith.negf %45 : vector<4x128xf32>
    %47 = math.exp %46 : vector<4x128xf32>
    %cst_19 = arith.constant 1.000000e+00 : f32
    %48 = vector.broadcast %cst_19 : f32 to vector<4x128xf32>
    %49 = arith.addf %48, %47 : vector<4x128xf32>
    %50 = arith.divf %48, %49 : vector<4x128xf32>
    %51 = math.tanh %45 : vector<4x128xf32>
    %52 = vector.extract_strided_slice %50 {offsets = [0, 0], sizes = [4, 32], strides = [1, 1]} : vector<4x128xf32> to vector<4x32xf32>
    %53 = vector.extract_strided_slice %50 {offsets = [0, 32], sizes = [4, 32], strides = [1, 1]} : vector<4x128xf32> to vector<4x32xf32>
    %54 = vector.extract_strided_slice %51 {offsets = [0, 64], sizes = [4, 32], strides = [1, 1]} : vector<4x128xf32> to vector<4x32xf32>
    %55 = vector.extract_strided_slice %50 {offsets = [0, 96], sizes = [4, 32], strides = [1, 1]} : vector<4x128xf32> to vector<4x32xf32>
    %56 = arith.mulf %53, %39 : vector<4x32xf32>
    %57 = arith.mulf %52, %54 : vector<4x32xf32>
    %58 = arith.addf %56, %57 : vector<4x32xf32>
    %59 = math.tanh %58 : vector<4x32xf32>
    %60 = arith.mulf %55, %59 : vector<4x32xf32>
    %61 = vector.broadcast %c1_i32 : i32 to vector<4x1xi32>
    %62 = arith.cmpi slt, %61, %8 : vector<4x1xi32>
    %63 = vector.shape_cast %62 : vector<4x1xi1> to vector<4x1xi1>
    %64 = vector.broadcast %63 : vector<4x1xi1> to vector<4x32xi1>
    %65 = arith.select %64, %60, %36 : vector<4x32xi1>, vector<4x32xf32>
    %66 = vector.shape_cast %62 : vector<4x1xi1> to vector<4x1xi1>
    %67 = vector.broadcast %66 : vector<4x1xi1> to vector<4x32xi1>
    %68 = arith.select %67, %58, %39 : vector<4x32xi1>, vector<4x32xf32>
    %c2_i32 = arith.constant 2 : i32
    %c4_i32_20 = arith.constant 4 : i32
    %69 = arith.muli %c2_i32, %c4_i32_20 : i32
    %70 = tpu.assume_multiple %69, 4 : i32
    %71 = arith.index_cast %70 : i32 to index
    %c0_21 = arith.constant 0 : index
    %72 = vector.load %arg10[%71, %c0_21] : memref<32x128xf32, #tpu.memory_space<vmem>>, vector<4x128xf32>
    %cst_22 = arith.constant dense<0.000000e+00> : vector<4x128xf32>
    %73 = tpu.matmul %65, %7, %cst_22 {dimension_numbers = #tpu.dot_dimension_numbers<[1], [0], [0], [1], [0, 0, 1, 1], [], []>} : vector<4x32xf32>, vector<32x128xf32>, vector<4x128xf32> -> vector<4x128xf32>
    %74 = arith.addf %72, %73 : vector<4x128xf32>
    %75 = arith.negf %74 : vector<4x128xf32>
    %76 = math.exp %75 : vector<4x128xf32>
    %cst_23 = arith.constant 1.000000e+00 : f32
    %77 = vector.broadcast %cst_23 : f32 to vector<4x128xf32>
    %78 = arith.addf %77, %76 : vector<4x128xf32>
    %79 = arith.divf %77, %78 : vector<4x128xf32>
    %80 = math.tanh %74 : vector<4x128xf32>
    %81 = vector.extract_strided_slice %79 {offsets = [0, 0], sizes = [4, 32], strides = [1, 1]} : vector<4x128xf32> to vector<4x32xf32>
    %82 = vector.extract_strided_slice %79 {offsets = [0, 32], sizes = [4, 32], strides = [1, 1]} : vector<4x128xf32> to vector<4x32xf32>
    %83 = vector.extract_strided_slice %80 {offsets = [0, 64], sizes = [4, 32], strides = [1, 1]} : vector<4x128xf32> to vector<4x32xf32>
    %84 = vector.extract_strided_slice %79 {offsets = [0, 96], sizes = [4, 32], strides = [1, 1]} : vector<4x128xf32> to vector<4x32xf32>
    %85 = arith.mulf %82, %68 : vector<4x32xf32>
    %86 = arith.mulf %81, %83 : vector<4x32xf32>
    %87 = arith.addf %85, %86 : vector<4x32xf32>
    %88 = math.tanh %87 : vector<4x32xf32>
    %89 = arith.mulf %84, %88 : vector<4x32xf32>
    %90 = vector.broadcast %c2_i32 : i32 to vector<4x1xi32>
    %91 = arith.cmpi slt, %90, %8 : vector<4x1xi32>
    %92 = vector.shape_cast %91 : vector<4x1xi1> to vector<4x1xi1>
    %93 = vector.broadcast %92 : vector<4x1xi1> to vector<4x32xi1>
    %94 = arith.select %93, %89, %65 : vector<4x32xi1>, vector<4x32xf32>
    %95 = vector.shape_cast %91 : vector<4x1xi1> to vector<4x1xi1>
    %96 = vector.broadcast %95 : vector<4x1xi1> to vector<4x32xi1>
    %97 = arith.select %96, %87, %68 : vector<4x32xi1>, vector<4x32xf32>
    %c3_i32 = arith.constant 3 : i32
    %c4_i32_24 = arith.constant 4 : i32
    %98 = arith.muli %c3_i32, %c4_i32_24 : i32
    %99 = tpu.assume_multiple %98, 4 : i32
    %100 = arith.index_cast %99 : i32 to index
    %c0_25 = arith.constant 0 : index
    %101 = vector.load %arg10[%100, %c0_25] : memref<32x128xf32, #tpu.memory_space<vmem>>, vector<4x128xf32>
    %cst_26 = arith.constant dense<0.000000e+00> : vector<4x128xf32>
    %102 = tpu.matmul %94, %7, %cst_26 {dimension_numbers = #tpu.dot_dimension_numbers<[1], [0], [0], [1], [0, 0, 1, 1], [], []>} : vector<4x32xf32>, vector<32x128xf32>, vector<4x128xf32> -> vector<4x128xf32>
    %103 = arith.addf %101, %102 : vector<4x128xf32>
    %104 = arith.negf %103 : vector<4x128xf32>
    %105 = math.exp %104 : vector<4x128xf32>
    %cst_27 = arith.constant 1.000000e+00 : f32
    %106 = vector.broadcast %cst_27 : f32 to vector<4x128xf32>
    %107 = arith.addf %106, %105 : vector<4x128xf32>
    %108 = arith.divf %106, %107 : vector<4x128xf32>
    %109 = math.tanh %103 : vector<4x128xf32>
    %110 = vector.extract_strided_slice %108 {offsets = [0, 0], sizes = [4, 32], strides = [1, 1]} : vector<4x128xf32> to vector<4x32xf32>
    %111 = vector.extract_strided_slice %108 {offsets = [0, 32], sizes = [4, 32], strides = [1, 1]} : vector<4x128xf32> to vector<4x32xf32>
    %112 = vector.extract_strided_slice %109 {offsets = [0, 64], sizes = [4, 32], strides = [1, 1]} : vector<4x128xf32> to vector<4x32xf32>
    %113 = vector.extract_strided_slice %108 {offsets = [0, 96], sizes = [4, 32], strides = [1, 1]} : vector<4x128xf32> to vector<4x32xf32>
    %114 = arith.mulf %111, %97 : vector<4x32xf32>
    %115 = arith.mulf %110, %112 : vector<4x32xf32>
    %116 = arith.addf %114, %115 : vector<4x32xf32>
    %117 = math.tanh %116 : vector<4x32xf32>
    %118 = arith.mulf %113, %117 : vector<4x32xf32>
    %119 = vector.broadcast %c3_i32 : i32 to vector<4x1xi32>
    %120 = arith.cmpi slt, %119, %8 : vector<4x1xi32>
    %121 = vector.shape_cast %120 : vector<4x1xi1> to vector<4x1xi1>
    %122 = vector.broadcast %121 : vector<4x1xi1> to vector<4x32xi1>
    %123 = arith.select %122, %118, %94 : vector<4x32xi1>, vector<4x32xf32>
    %124 = vector.shape_cast %120 : vector<4x1xi1> to vector<4x1xi1>
    %125 = vector.broadcast %124 : vector<4x1xi1> to vector<4x32xi1>
    %126 = arith.select %125, %116, %97 : vector<4x32xi1>, vector<4x32xf32>
    %c4_i32_28 = arith.constant 4 : i32
    %c4_i32_29 = arith.constant 4 : i32
    %127 = arith.muli %c4_i32_28, %c4_i32_29 : i32
    %128 = tpu.assume_multiple %127, 4 : i32
    %129 = arith.index_cast %128 : i32 to index
    %c0_30 = arith.constant 0 : index
    %130 = vector.load %arg10[%129, %c0_30] : memref<32x128xf32, #tpu.memory_space<vmem>>, vector<4x128xf32>
    %cst_31 = arith.constant dense<0.000000e+00> : vector<4x128xf32>
    %131 = tpu.matmul %123, %7, %cst_31 {dimension_numbers = #tpu.dot_dimension_numbers<[1], [0], [0], [1], [0, 0, 1, 1], [], []>} : vector<4x32xf32>, vector<32x128xf32>, vector<4x128xf32> -> vector<4x128xf32>
    %132 = arith.addf %130, %131 : vector<4x128xf32>
    %133 = arith.negf %132 : vector<4x128xf32>
    %134 = math.exp %133 : vector<4x128xf32>
    %cst_32 = arith.constant 1.000000e+00 : f32
    %135 = vector.broadcast %cst_32 : f32 to vector<4x128xf32>
    %136 = arith.addf %135, %134 : vector<4x128xf32>
    %137 = arith.divf %135, %136 : vector<4x128xf32>
    %138 = math.tanh %132 : vector<4x128xf32>
    %139 = vector.extract_strided_slice %137 {offsets = [0, 0], sizes = [4, 32], strides = [1, 1]} : vector<4x128xf32> to vector<4x32xf32>
    %140 = vector.extract_strided_slice %137 {offsets = [0, 32], sizes = [4, 32], strides = [1, 1]} : vector<4x128xf32> to vector<4x32xf32>
    %141 = vector.extract_strided_slice %138 {offsets = [0, 64], sizes = [4, 32], strides = [1, 1]} : vector<4x128xf32> to vector<4x32xf32>
    %142 = vector.extract_strided_slice %137 {offsets = [0, 96], sizes = [4, 32], strides = [1, 1]} : vector<4x128xf32> to vector<4x32xf32>
    %143 = arith.mulf %140, %126 : vector<4x32xf32>
    %144 = arith.mulf %139, %141 : vector<4x32xf32>
    %145 = arith.addf %143, %144 : vector<4x32xf32>
    %146 = math.tanh %145 : vector<4x32xf32>
    %147 = arith.mulf %142, %146 : vector<4x32xf32>
    %148 = vector.broadcast %c4_i32_28 : i32 to vector<4x1xi32>
    %149 = arith.cmpi slt, %148, %8 : vector<4x1xi32>
    %150 = vector.shape_cast %149 : vector<4x1xi1> to vector<4x1xi1>
    %151 = vector.broadcast %150 : vector<4x1xi1> to vector<4x32xi1>
    %152 = arith.select %151, %147, %123 : vector<4x32xi1>, vector<4x32xf32>
    %153 = vector.shape_cast %149 : vector<4x1xi1> to vector<4x1xi1>
    %154 = vector.broadcast %153 : vector<4x1xi1> to vector<4x32xi1>
    %155 = arith.select %154, %145, %126 : vector<4x32xi1>, vector<4x32xf32>
    %c5_i32 = arith.constant 5 : i32
    %c4_i32_33 = arith.constant 4 : i32
    %156 = arith.muli %c5_i32, %c4_i32_33 : i32
    %157 = tpu.assume_multiple %156, 4 : i32
    %158 = arith.index_cast %157 : i32 to index
    %c0_34 = arith.constant 0 : index
    %159 = vector.load %arg10[%158, %c0_34] : memref<32x128xf32, #tpu.memory_space<vmem>>, vector<4x128xf32>
    %cst_35 = arith.constant dense<0.000000e+00> : vector<4x128xf32>
    %160 = tpu.matmul %152, %7, %cst_35 {dimension_numbers = #tpu.dot_dimension_numbers<[1], [0], [0], [1], [0, 0, 1, 1], [], []>} : vector<4x32xf32>, vector<32x128xf32>, vector<4x128xf32> -> vector<4x128xf32>
    %161 = arith.addf %159, %160 : vector<4x128xf32>
    %162 = arith.negf %161 : vector<4x128xf32>
    %163 = math.exp %162 : vector<4x128xf32>
    %cst_36 = arith.constant 1.000000e+00 : f32
    %164 = vector.broadcast %cst_36 : f32 to vector<4x128xf32>
    %165 = arith.addf %164, %163 : vector<4x128xf32>
    %166 = arith.divf %164, %165 : vector<4x128xf32>
    %167 = math.tanh %161 : vector<4x128xf32>
    %168 = vector.extract_strided_slice %166 {offsets = [0, 0], sizes = [4, 32], strides = [1, 1]} : vector<4x128xf32> to vector<4x32xf32>
    %169 = vector.extract_strided_slice %166 {offsets = [0, 32], sizes = [4, 32], strides = [1, 1]} : vector<4x128xf32> to vector<4x32xf32>
    %170 = vector.extract_strided_slice %167 {offsets = [0, 64], sizes = [4, 32], strides = [1, 1]} : vector<4x128xf32> to vector<4x32xf32>
    %171 = vector.extract_strided_slice %166 {offsets = [0, 96], sizes = [4, 32], strides = [1, 1]} : vector<4x128xf32> to vector<4x32xf32>
    %172 = arith.mulf %169, %155 : vector<4x32xf32>
    %173 = arith.mulf %168, %170 : vector<4x32xf32>
    %174 = arith.addf %172, %173 : vector<4x32xf32>
    %175 = math.tanh %174 : vector<4x32xf32>
    %176 = arith.mulf %171, %175 : vector<4x32xf32>
    %177 = vector.broadcast %c5_i32 : i32 to vector<4x1xi32>
    %178 = arith.cmpi slt, %177, %8 : vector<4x1xi32>
    %179 = vector.shape_cast %178 : vector<4x1xi1> to vector<4x1xi1>
    %180 = vector.broadcast %179 : vector<4x1xi1> to vector<4x32xi1>
    %181 = arith.select %180, %176, %152 : vector<4x32xi1>, vector<4x32xf32>
    %182 = vector.shape_cast %178 : vector<4x1xi1> to vector<4x1xi1>
    %183 = vector.broadcast %182 : vector<4x1xi1> to vector<4x32xi1>
    %184 = arith.select %183, %174, %155 : vector<4x32xi1>, vector<4x32xf32>
    %c6_i32 = arith.constant 6 : i32
    %c4_i32_37 = arith.constant 4 : i32
    %185 = arith.muli %c6_i32, %c4_i32_37 : i32
    %186 = tpu.assume_multiple %185, 4 : i32
    %187 = arith.index_cast %186 : i32 to index
    %c0_38 = arith.constant 0 : index
    %188 = vector.load %arg10[%187, %c0_38] : memref<32x128xf32, #tpu.memory_space<vmem>>, vector<4x128xf32>
    %cst_39 = arith.constant dense<0.000000e+00> : vector<4x128xf32>
    %189 = tpu.matmul %181, %7, %cst_39 {dimension_numbers = #tpu.dot_dimension_numbers<[1], [0], [0], [1], [0, 0, 1, 1], [], []>} : vector<4x32xf32>, vector<32x128xf32>, vector<4x128xf32> -> vector<4x128xf32>
    %190 = arith.addf %188, %189 : vector<4x128xf32>
    %191 = arith.negf %190 : vector<4x128xf32>
    %192 = math.exp %191 : vector<4x128xf32>
    %cst_40 = arith.constant 1.000000e+00 : f32
    %193 = vector.broadcast %cst_40 : f32 to vector<4x128xf32>
    %194 = arith.addf %193, %192 : vector<4x128xf32>
    %195 = arith.divf %193, %194 : vector<4x128xf32>
    %196 = math.tanh %190 : vector<4x128xf32>
    %197 = vector.extract_strided_slice %195 {offsets = [0, 0], sizes = [4, 32], strides = [1, 1]} : vector<4x128xf32> to vector<4x32xf32>
    %198 = vector.extract_strided_slice %195 {offsets = [0, 32], sizes = [4, 32], strides = [1, 1]} : vector<4x128xf32> to vector<4x32xf32>
    %199 = vector.extract_strided_slice %196 {offsets = [0, 64], sizes = [4, 32], strides = [1, 1]} : vector<4x128xf32> to vector<4x32xf32>
    %200 = vector.extract_strided_slice %195 {offsets = [0, 96], sizes = [4, 32], strides = [1, 1]} : vector<4x128xf32> to vector<4x32xf32>
    %201 = arith.mulf %198, %184 : vector<4x32xf32>
    %202 = arith.mulf %197, %199 : vector<4x32xf32>
    %203 = arith.addf %201, %202 : vector<4x32xf32>
    %204 = math.tanh %203 : vector<4x32xf32>
    %205 = arith.mulf %200, %204 : vector<4x32xf32>
    %206 = vector.broadcast %c6_i32 : i32 to vector<4x1xi32>
    %207 = arith.cmpi slt, %206, %8 : vector<4x1xi32>
    %208 = vector.shape_cast %207 : vector<4x1xi1> to vector<4x1xi1>
    %209 = vector.broadcast %208 : vector<4x1xi1> to vector<4x32xi1>
    %210 = arith.select %209, %205, %181 : vector<4x32xi1>, vector<4x32xf32>
    %211 = vector.shape_cast %207 : vector<4x1xi1> to vector<4x1xi1>
    %212 = vector.broadcast %211 : vector<4x1xi1> to vector<4x32xi1>
    %213 = arith.select %212, %203, %184 : vector<4x32xi1>, vector<4x32xf32>
    %c7_i32 = arith.constant 7 : i32
    %c4_i32_41 = arith.constant 4 : i32
    %214 = arith.muli %c7_i32, %c4_i32_41 : i32
    %215 = tpu.assume_multiple %214, 4 : i32
    %216 = arith.index_cast %215 : i32 to index
    %c0_42 = arith.constant 0 : index
    %217 = vector.load %arg10[%216, %c0_42] : memref<32x128xf32, #tpu.memory_space<vmem>>, vector<4x128xf32>
    %cst_43 = arith.constant dense<0.000000e+00> : vector<4x128xf32>
    %218 = tpu.matmul %210, %7, %cst_43 {dimension_numbers = #tpu.dot_dimension_numbers<[1], [0], [0], [1], [0, 0, 1, 1], [], []>} : vector<4x32xf32>, vector<32x128xf32>, vector<4x128xf32> -> vector<4x128xf32>
    %219 = arith.addf %217, %218 : vector<4x128xf32>
    %220 = arith.negf %219 : vector<4x128xf32>
    %221 = math.exp %220 : vector<4x128xf32>
    %cst_44 = arith.constant 1.000000e+00 : f32
    %222 = vector.broadcast %cst_44 : f32 to vector<4x128xf32>
    %223 = arith.addf %222, %221 : vector<4x128xf32>
    %224 = arith.divf %222, %223 : vector<4x128xf32>
    %225 = math.tanh %219 : vector<4x128xf32>
    %226 = vector.extract_strided_slice %224 {offsets = [0, 0], sizes = [4, 32], strides = [1, 1]} : vector<4x128xf32> to vector<4x32xf32>
    %227 = vector.extract_strided_slice %224 {offsets = [0, 32], sizes = [4, 32], strides = [1, 1]} : vector<4x128xf32> to vector<4x32xf32>
    %228 = vector.extract_strided_slice %225 {offsets = [0, 64], sizes = [4, 32], strides = [1, 1]} : vector<4x128xf32> to vector<4x32xf32>
    %229 = vector.extract_strided_slice %224 {offsets = [0, 96], sizes = [4, 32], strides = [1, 1]} : vector<4x128xf32> to vector<4x32xf32>
    %230 = arith.mulf %227, %213 : vector<4x32xf32>
    %231 = arith.mulf %226, %228 : vector<4x32xf32>
    %232 = arith.addf %230, %231 : vector<4x32xf32>
    %233 = math.tanh %232 : vector<4x32xf32>
    %234 = arith.mulf %229, %233 : vector<4x32xf32>
    %235 = vector.broadcast %c7_i32 : i32 to vector<4x1xi32>
    %236 = arith.cmpi slt, %235, %8 : vector<4x1xi32>
    %237 = vector.shape_cast %236 : vector<4x1xi1> to vector<4x1xi1>
    %238 = vector.broadcast %237 : vector<4x1xi1> to vector<4x32xi1>
    %239 = arith.select %238, %234, %210 : vector<4x32xi1>, vector<4x32xf32>
    %240 = vector.shape_cast %236 : vector<4x1xi1> to vector<4x1xi1>
    %241 = vector.broadcast %240 : vector<4x1xi1> to vector<4x32xi1>
    %242 = arith.select %241, %232, %213 : vector<4x32xi1>, vector<4x32xf32>
    %c8_i32 = arith.constant 8 : i32
    %c0_45 = arith.constant 0 : index
    %c0_46 = arith.constant 0 : index
    %243 = vector.load %arg9[%c0_45, %c0_46] : memref<4x32xf32, #tpu.memory_space<vmem>>, vector<4x32xf32>
    tpu.vector_store %arg9[%c0_45, %c0_46], %239 {strides = array<i32>} : memref<4x32xf32, #tpu.memory_space<vmem>>, vector<4x32xf32>,
    %c0_47 = arith.constant 0 : index
    %c0_48 = arith.constant 0 : index
    %244 = vector.load %arg5[%c0_47, %c0_48] : memref<32x8xf32, #tpu.memory_space<vmem>>, vector<32x8xf32>
    %cst_49 = arith.constant dense<0.000000e+00> : vector<4x8xf32>
    %245 = tpu.matmul %239, %244, %cst_49 {dimension_numbers = #tpu.dot_dimension_numbers<[1], [0], [0], [1], [0, 0, 1, 1], [], []>} : vector<4x32xf32>, vector<32x8xf32>, vector<4x8xf32> -> vector<4x8xf32>
    %c0_50 = arith.constant 0 : index
    %c0_51 = arith.constant 0 : index
    %246 = vector.load %arg6[%c0_50, %c0_51] : memref<1x8xf32, #tpu.memory_space<vmem>>, vector<1x8xf32>
    %247 = vector.broadcast %246 : vector<1x8xf32> to vector<4x8xf32>
    %248 = arith.addf %245, %247 : vector<4x8xf32>
    %cst_52 = arith.constant dense<0xFF800000> : vector<4xf32>
    %249 = vector.multi_reduction <maximumf>, %248, %cst_52 [1] : vector<4x8xf32> to vector<4xf32>
    %250 = vector.shape_cast %249 : vector<4xf32> to vector<4x1xf32>
    %251 = vector.broadcast %250 : vector<4x1xf32> to vector<4x8xf32>
    %252 = arith.subf %248, %251 : vector<4x8xf32>
    %253 = math.exp %252 : vector<4x8xf32>
    %cst_53 = arith.constant dense<0.000000e+00> : vector<4xf32>
    %254 = vector.multi_reduction <add>, %253, %cst_53 [1] : vector<4x8xf32> to vector<4xf32>
    %255 = vector.shape_cast %254 : vector<4xf32> to vector<4x1xf32>
    %256 = math.log %255 : vector<4x1xf32>
    %257 = vector.broadcast %256 : vector<4x1xf32> to vector<4x8xf32>
    %258 = arith.subf %252, %257 : vector<4x8xf32>
    %c0_54 = arith.constant 0 : index
    %c0_55 = arith.constant 0 : index
    %259 = vector.load %arg7[%c0_54, %c0_55] : memref<4x8xf32, #tpu.memory_space<vmem>>, vector<4x8xf32>
    %260 = arith.mulf %258, %259 : vector<4x8xf32>
    %cst_56 = arith.constant dense<0.000000e+00> : vector<4xf32>
    %261 = vector.multi_reduction <add>, %260, %cst_56 [1] : vector<4x8xf32> to vector<4xf32>
    %262 = vector.shape_cast %261 : vector<4xf32> to vector<4x1xf32>
    %263 = vector.shape_cast %262 : vector<4x1xf32> to vector<1x4x1xf32>
    %cst_57 = arith.constant dense<0.000000e+00> : vector<1xf32>
    %264 = vector.multi_reduction <add>, %263, %cst_57 [1, 2] : vector<1x4x1xf32> to vector<1xf32>
    %265 = vector.shape_cast %264 : vector<1xf32> to vector<1x1x1xf32>
    %266 = vector.extract %265[0, 0, 0] : f32 from vector<1x1x1xf32>
    %267 = vector.broadcast %266 : f32 to vector<1x1xf32>
    %cst_58 = arith.constant 4.000000e+00 : f32
    %268 = vector.broadcast %cst_58 : f32 to vector<1x1xf32>
    %269 = arith.divf %267, %268 : vector<1x1xf32>
    %cst_59 = arith.constant 0.000000e+00 : f32
    %270 = vector.broadcast %cst_59 : f32 to vector<1x1xf32>
    %271 = arith.subf %270, %269 : vector<1x1xf32>
    %c0_60 = arith.constant 0 : index
    %c0_61 = arith.constant 0 : index
    %272 = vector.load %arg8[%c0_60, %c0_61] : memref<1x1xf32, #tpu.memory_space<vmem>>, vector<1x1xf32>
    tpu.vector_store %arg8[%c0_60, %c0_61], %271 {strides = array<i32>} : memref<1x1xf32, #tpu.memory_space<vmem>>, vector<1x1xf32>,
    return
  }
}

</mosaic_0001>

<bundles_post_ra>
// kernel: tpu_custom_call.1
= control target key start
LH: loop header
LB: loop body
LE: loop exit
PB: predicated region body
PF: predicated region fallthrough
CT: control target
= control target key end

     0   :  { %15 = vsyncpa [#allocation4], 0  ;;  %vm46_vm0 = vcmask 130048   ;;  %v1487_v5 = vmov 0.0   ;;  %s1780_s0 = inlined_call_operand.vmem [shape: f32[32,16], index: 0, kind: input, shape index: {}]   ;;  %s1781_s1 = inlined_call_operand.vmem [shape: s32[4,1], index: 1, kind: input, shape index: {}]   ;;  %s1782_s2 = inlined_call_operand.vmem [shape: f32[16,128], index: 2, kind: input, shape index: {}]   ;;  %s1783_s3 = inlined_call_operand.vmem [shape: f32[32,128], index: 3, kind: input, shape index: {}]   ;;  %s1784_s4 = inlined_call_operand.vmem [shape: f32[1,128], index: 4, kind: input, shape index: {}]   ;;  %s1785_s5 = inlined_call_operand.vmem [shape: f32[32,8], index: 5, kind: input, shape index: {}]   ;;  %s1786_s6 = inlined_call_operand.vmem [shape: f32[1,8], index: 6, kind: input, shape index: {}]   ;;  %s1787_s7 = inlined_call_operand.vmem [shape: f32[4,8], index: 7, kind: input, shape index: {}]   ;;  %s1788_s8 = inlined_call_operand.hbm [shape: f32[1,1], index: 8, kind: output, shape index: {0}]   ;;  %s1789_s9 = inlined_call_operand.hbm [shape: f32[4,32], index: 9, kind: output, shape index: {1}]  }
   0x1   :  { %v38_v0 = vld [vmem:[%s1782_s2 + $0x8] sm:$0xff]  ;;  %v37_v1 = vld [vmem:[%s1782_s2] sm:$0xff]  ;;  %v1557_v3 = vld [vmem:[%s1783_s3 + $0x18] sm:$0xff]  ;;  %1265 = vmatprep.subr.mxu1 %v1487_v5 }
   0x2   :  { %v33_v2 = vld [vmem:[%s1780_s0] sm:$0xff]  ;;  %1255 = vmatprep.subr.mxu0 %v38_v0  ;;  %v34_v4 = vld [vmem:[%s1780_s0 + $0x8] sm:$0xff]  ;;  %v1566_v6 = vld [vmem:[%s1783_s3 + $0x10] sm:$0xff] }
   0x3   :  { %1259 = vmatprep.mubr.msk.f32.mxu0 %vm46_vm0, %v33_v2  ;;  %1256 = vmatpush3.msra.mxu0 %v38_v0 }
   0x4   :  { %16 = vsyncpa [#allocation6], 0  ;;  %1257 = vmatprep.subr.mxu0 %v37_v1  ;;  %1266 = vmatpush3.msra.mxu1 %v1557_v3  ;;  %v1573_v7 = vld [vmem:[%s1783_s3 + $0x8] sm:$0xff]  ;;  %v1581_v8 = vld [vmem:[%s1783_s3] sm:$0xff]  ;;  %vm1488_vm1 = vmmov 0   ;;  %v1489_v10 = vmov 0  }
   0x5   :  { %1258 = vmatpush3.msra.mxu0 %v37_v1  ;;  %1267 = vmatprep.subr.mxu1 %v1487_v5  ;;  %v1612_v9 = vld [vmem:[%s1781_s1] sm:$0xf]  ;;  %s1490_s1 = smov 64   ;;  %v35_v31 = vld [vmem:[%s1780_s0 + $0x10] sm:$0xff]  ;;  %v36_v32 = vld [vmem:[%s1780_s0 + $0x18] sm:$0xff]  ;;  %vm154_vm4 = vcmask 261120  }
   0x6   :  { %1260 = vmatmul.mubr.msk.f32.vlgmr.msra.gmra.mxu0 %vm46_vm0, %v34_v4  ;;  %1268 = vmatpush3.msra.mxu1 %v1566_v6  ;;  %vm253_vm2 = vcmp.gt.s32.totalorder %v1612_v9, 0  ;;  %v1182_v12 = vld [vmem:[%s1784_s4] ss:$0 sm:$0xff]  ;;  %s1491_s4 = smov 32   ;;  %vm363_vm5 = vcmp.gt.s32.totalorder %v1612_v9, 1  ;;  %vm473_vm7 = vcmp.gt.s32.totalorder %v1612_v9, 2 }
   0x7   :  { %1269 = vmatprep.subr.mxu1 %v1487_v5  ;;  %1273 = vmatprep.mubr.msk.f32.mxu1 %vm1488_vm1, %v1487_v5  ;;  %v254_v11 = vsel %vm253_vm2, 1, %v1489_v10  ;;  %v364_v48 = vsel %vm363_vm5, 1, %v1489_v10  ;;  %vm583_vm9 = vcmp.gt.s32.totalorder %v1612_v9, 3  ;;  %vm693_vm11 = vcmp.gt.s32.totalorder %v1612_v9, 4  ;;  %s1492_s2 = smov [#allocation5]  }
   0x8   :  { %1270 = vmatpush3.msra.mxu1 %v1573_v7  ;;  %1276 = vmatprep.subr.mxu0 %v1487_v5  ;;  %vm803_vm13 = vcmp.gt.s32.totalorder %v1612_v9, 5  ;;  %vm913_vm15 = vcmp.gt.s32.totalorder %v1612_v9, 6  ;;  %vm1119_vm5 = vcmask 60416   ;;  %s1170_s19 = sshll.u32 %s1492_s2, 4  ;;  %s1171_s19 = int_to_ptr.vmem [resolvable:$true] %s1170_s19 }
   0x9   :  { %1271 = vmatprep.subr.mxu1 %v1487_v5  ;;  %1277 = vmatpush3.msra.mxu0 %v1557_v3  ;;  %s1443_s20 = scalar_lea.vmem %s1171_s19, 64  ;;  %p1448_p1 = scmp.lt.s32.totalorder %s1171_s19, %s1171_s19 }
   0xa   :  { %1272 = vmatpush3.msra.mxu1 %v1581_v8  ;;  %1278 = vmatprep.subr.mxu0 %v1487_v5  ;;  %p1444_p0 = scmp.ne.s32.totalorder %s1171_s19, %s1443_s20  ;;  %p1449_p2 = scmp.lt.s32.totalorder %s1443_s20, %s1443_s20 }
   0xb   :  { %1274 = vmatmul.mubr.f32.vlgmr.msra.gmra.mxu1 %v1487_v5  ;;  %1279 = vmatpush3.msra.mxu0 %v1566_v6 }
   0xc   :  { %1280 = vmatprep.subr.mxu0 %v1487_v5  ;;  %1287 = vmatprep.subr.mxu1 %v1487_v5  ;;  %p1450_p3 = por %p1449_p2, %p1448_p1 }
   0xd   :  { %1281 = vmatpush3.msra.mxu0 %v1573_v7  ;;  %1288 = vmatpush3.msra.mxu1 %v1557_v3 }
   0xe   :  { %1282 = vmatprep.subr.mxu0 %v1487_v5  ;;  %1289 = vmatprep.subr.mxu1 %v1487_v5  ;;  %p1451_p4 = pnand %p1450_p3, %p1444_p0 }
   0xf   :  { %1283 = vmatpush3.msra.mxu0 %v1581_v8  ;;  %1290 = vmatpush3.msra.mxu1 %v1566_v6 }
  0x10   :  { %1291 = vmatprep.subr.mxu1 %v1487_v5  ;;  %1295 = vmatprep.mubr.msk.f32.mxu1 %vm1488_vm1, %v1487_v5 }
  0x11   :  { %1292 = vmatpush3.msra.mxu1 %v1573_v7  ;;  %1298 = vmatprep.subr.mxu0 %v1487_v5 }
  0x12   :  { %1293 = vmatprep.subr.mxu1 %v1487_v5  ;;  %1373 = vset.pattern.permute.xlu1 %v1489_v10 }
  0x13   :  { %1294 = vmatpush3.msra.mxu1 %v1581_v8  ;;  %1374 = vset.pattern.permute.xlu0 %v1489_v10 }
  0x14   :  { %1309 = vmatprep.subr.mxu1 %v1487_v5  ;;  %256 = vperm.xlu1 %1373, %v254_v11  }
  0x15   :  { %1262 = vmatprep.mubr.msk.f32.mxu0 %vm46_vm0, %v35_v31 }
  0x16   :  { %1263 = vmatmul.mubr.msk.f32.gmra.mxu0 %vm46_vm0, %v36_v32 }
  0x17   :  { %1284 = vmatprep.mubr.msk.f32.mxu0 %vm1488_vm1, %v1487_v5 }
  0x8f   :  { %v257_v34 = vpop.permute.xlu1 %256 }
  0x90   :  { %vm258_vm3 = vcmp.eq.s32.totalorder %v257_v34, 1 }
  0xc6   :  { %v1261_v13 = vpop.f32.mrf.mxu0 }
  0xc7   :  { %v131_v14 = vadd.f32 %v1261_v13, %v1182_v12  ;;  %v474_v13 = vsel %vm473_vm7, 1, %v1489_v10 }
  0xc8   :  { %v125_v15 = vpop.f32.mrf.mxu0 }
  0xc9   :  { %145 = vst [vmem:[#allocation2 + $0x8] sm:$0xff] %v131_v14  ;;  %v126_v16 = vadd.f32 %v1182_v12, %v125_v15 }
  0xcb   :  { %144 = vst [vmem:[#allocation2] sm:$0xff] %v126_v16  ;;  %v224_v17 = vpop.f32.mrf.mxu1 }
  0xcd   :  { %v1275_v18 = vpop.f32.mrf.mxu1 }
  0xd0   :  { %v372_v1 = vld [vmem:[#allocation2 + $0x8] sm:$0xf] }
  0xd2   :  { %v153_v19 = vld [vmem:[#allocation2] sm:$0xf]  ;;  %v262_v43 = vld [vmem:[#allocation2 + $0x4] sm:$0xf] }
  0xd3   :  { %v228_v20 = vadd.f32 %v224_v17, %v153_v19 }
  0xd5   :  { %1375 = vtanh.f32 %v228_v20  ;;  %v1187_v22 = vmul.f32 -1.442695, %v228_v20 }
  0xd6   :  { %v1264_v38 = vpop.f32.mrf.mxu0 }
  0xd7   :  { %1377 = vpow2.f32 %v1187_v22  ;;  %v141_v39 = vadd.f32 %v1264_v38, %v1182_v12 }
  0xd8   :  { %v135_v40 = vpop.f32.mrf.mxu0 }
  0xd9   :  { %147 = vst [vmem:[#allocation2 + $0x18] sm:$0xff] %v141_v39  ;;  %v136_v41 = vadd.f32 %v1182_v12, %v135_v40 }
  0xdb   :  { %146 = vst [vmem:[#allocation2 + $0x10] sm:$0xff] %v136_v41 }
  0xe2   :  { %v1376_v21 = vpop.eup %1375 }
  0xe3   :  { %238 = vrot.lane.b32.xlu0 %v1376_v21, %s1490_s1 }
  0xe4   :  { %v1378_v23 = vpop.eup %1377 }
  0xe5   :  { %v232_v24 = vadd.f32 1.0, %v1378_v23 }
  0xe7   :  { %1379 = vrcp.f32 %v232_v24 }
  0xf4   :  { %v1380_v25 = vpop.eup %1379 }
  0xf5   :  { %v236_v28 = vmul.f32 0.0, %v1380_v25 }
 0x155   :  { %v239_v26 = vpop.permute.xlu0 %238 }
 0x156   :  { %v241_v27 = vmul.f32 %v1380_v25, %v239_v26 }
 0x158   :  { %243 = vrot.lane.b32.xlu0 %v241_v27, %s1491_s4 }
 0x1ca   :  { %v244_v29 = vpop.permute.xlu0 %243 }
 0x1cb   :  { %v246_v30 = vadd.f32 %v244_v29, %v236_v28 }
 0x1cd   :  { %1381 = vtanh.f32 %v246_v30  ;;  %v260_v55 = vsel %vm258_vm3, %v246_v30, 0.0  ;;  %v482_v30 = vld [vmem:[#allocation2 + $0xc] sm:$0xf] }
 0x1da   :  { %v1382_v33 = vpop.eup %1381 }
 0x1db   :  { %249 = vrot.lane.b32.xlu1 %v1382_v33, %s1490_s1 }
 0x24d   :  { %v250_v35 = vpop.permute.xlu1 %249 }
 0x24e   :  { %v252_v36 = vmul.f32 %v1380_v25, %v250_v35  ;;  %v584_v35 = vsel %vm583_vm9, 1, %v1489_v10 }
 0x250   :  { %v259_v37 = vsel %vm258_vm3, %v252_v36, 0.0  ;;  %vm1034_vm3 = vcmask 257024  }
 0x251   :  { %264 = vrot.lane.b32.xlu0 %v259_v37, %s1491_s4 }
 0x2c3   :  { %v265_v42 = vpop.permute.xlu0 %264 }
 0x2c4   :  { %1285 = vmatmul.mubr.msk.f32.vlgmr.msra.gmra.mxu0 %vm154_vm4, %v265_v42 }
 0x2c5   :  { %1299 = vmatpush3.msra.mxu0 %v1557_v3  ;;  %1306 = vmatprep.mubr.msk.f32.mxu0 %vm1488_vm1, %v1487_v5 }
 0x2c6   :  { %1300 = vmatprep.subr.mxu0 %v1487_v5 }
 0x2c7   :  { %1301 = vmatpush3.msra.mxu0 %v1566_v6 }
 0x2c8   :  { %1302 = vmatprep.subr.mxu0 %v1487_v5 }
 0x2c9   :  { %1303 = vmatpush3.msra.mxu0 %v1573_v7 }
 0x2ca   :  { %1304 = vmatprep.subr.mxu0 %v1487_v5 }
 0x2cb   :  { %1305 = vmatpush3.msra.mxu0 %v1581_v8 }
 0x2cc   :  { %1320 = vmatprep.subr.mxu0 %v1487_v5 }
 0x384   :  { %v334_v44 = vpop.f32.mrf.mxu0 }
 0x385   :  { %v338_v45 = vadd.f32 %v334_v44, %v262_v43 }
 0x386   :  { %v1286_v46 = vpop.f32.mrf.mxu0 }
 0x387   :  { %1383 = vtanh.f32 %v338_v45  ;;  %v1189_v49 = vmul.f32 -1.442695, %v338_v45 }
 0x389   :  { %1385 = vpow2.f32 %v1189_v49 }
 0x394   :  { %v1384_v47 = vpop.eup %1383 }
 0x395   :  { %348 = vrot.lane.b32.xlu1 %v1384_v47, %s1490_s1 }
 0x396   :  { %v1386_v50 = vpop.eup %1385 }
 0x397   :  { %v342_v51 = vadd.f32 1.0, %v1386_v50 }
 0x399   :  { %366 = vperm.xlu1 %1373, %v364_v48   ;;  %1387 = vrcp.f32 %v342_v51 }
 0x3a6   :  { %v1388_v52 = vpop.eup %1387 }
 0x3a7   :  { %v346_v56 = vmul.f32 %v1388_v52, %v260_v55 }
 0x407   :  { %v349_v53 = vpop.permute.xlu1 %348 }
 0x408   :  { %v351_v54 = vmul.f32 %v1388_v52, %v349_v53 }
 0x40a   :  { %353 = vrot.lane.b32.xlu0 %v351_v54, %s1491_s4 }
 0x414   :  { %v367_v60 = vpop.permute.xlu1 %366 }
 0x415   :  { %vm368_vm6 = vcmp.eq.s32.totalorder %v367_v60, 1 }
 0x47c   :  { %v354_v57 = vpop.permute.xlu0 %353 }
 0x47d   :  { %v356_v58 = vadd.f32 %v354_v57, %v346_v56  ;;  %v694_v57 = vsel %vm693_vm11, 1, %v1489_v10 }
 0x47f   :  { %1389 = vtanh.f32 %v356_v58  ;;  %v370_v20 = vsel %vm368_vm6, %v356_v58, %v260_v55 }
 0x48c   :  { %v1390_v59 = vpop.eup %1389 }
 0x48d   :  { %359 = vrot.lane.b32.xlu0 %v1390_v59, %s1490_s1 }
 0x4ff   :  { %v360_v61 = vpop.permute.xlu0 %359 }
 0x500   :  { %v362_v62 = vmul.f32 %v1388_v52, %v360_v61  ;;  %v592_v52 = vld [vmem:[#allocation2 + $0x10] sm:$0xf] }
 0x502   :  { %v369_v63 = vsel %vm368_vm6, %v362_v62, %v259_v37 }
 0x503   :  { %374 = vrot.lane.b32.xlu1 %v369_v63, %s1491_s4 }
 0x575   :  { %v375_v0 = vpop.permute.xlu1 %374 }
 0x576   :  { %1296 = vmatmul.mubr.msk.f32.vlgmr.msra.gmra.mxu1 %vm154_vm4, %v375_v0 }
 0x577   :  { %1310 = vmatpush3.msra.mxu1 %v1557_v3  ;;  %1317 = vmatprep.mubr.msk.f32.mxu1 %vm1488_vm1, %v1487_v5 }
 0x578   :  { %1311 = vmatprep.subr.mxu1 %v1487_v5 }
 0x579   :  { %1312 = vmatpush3.msra.mxu1 %v1566_v6 }
 0x57a   :  { %1313 = vmatprep.subr.mxu1 %v1487_v5 }
 0x57b   :  { %1314 = vmatpush3.msra.mxu1 %v1573_v7 }
 0x57c   :  { %1315 = vmatprep.subr.mxu1 %v1487_v5 }
 0x57d   :  { %1316 = vmatpush3.msra.mxu1 %v1581_v8 }
 0x57e   :  { %1331 = vmatprep.subr.mxu1 %v1487_v5 }
 0x636   :  { %v444_v2 = vpop.f32.mrf.mxu1 }
 0x637   :  { %v448_v4 = vadd.f32 %v444_v2, %v372_v1 }
 0x638   :  { %v1297_v11 = vpop.f32.mrf.mxu1 }
 0x639   :  { %1391 = vtanh.f32 %v448_v4  ;;  %v1191_v14 = vmul.f32 -1.442695, %v448_v4 }
 0x63b   :  { %1393 = vpow2.f32 %v1191_v14 }
 0x646   :  { %v1392_v12 = vpop.eup %1391 }
 0x647   :  { %458 = vrot.lane.b32.xlu0 %v1392_v12, %s1490_s1 }
 0x648   :  { %v1394_v15 = vpop.eup %1393 }
 0x649   :  { %v452_v16 = vadd.f32 1.0, %v1394_v15 }
 0x64b   :  { %476 = vperm.xlu0 %1374, %v474_v13   ;;  %1395 = vrcp.f32 %v452_v16 }
 0x658   :  { %v1396_v17 = vpop.eup %1395 }
 0x659   :  { %v456_v21 = vmul.f32 %v1396_v17, %v370_v20 }
 0x6b9   :  { %v459_v18 = vpop.permute.xlu0 %458 }
 0x6ba   :  { %v461_v19 = vmul.f32 %v1396_v17, %v459_v18 }
 0x6bc   :  { %463 = vrot.lane.b32.xlu1 %v461_v19, %s1491_s4 }
 0x6c6   :  { %v477_v25 = vpop.permute.xlu0 %476 }
 0x6c7   :  { %vm478_vm8 = vcmp.eq.s32.totalorder %v477_v25, 1 }
 0x72e   :  { %v464_v22 = vpop.permute.xlu1 %463 }
 0x72f   :  { %v466_v23 = vadd.f32 %v464_v22, %v456_v21 }
 0x731   :  { %1397 = vtanh.f32 %v466_v23  ;;  %v480_v42 = vsel %vm478_vm8, %v466_v23, %v370_v20 }
 0x73e   :  { %v1398_v24 = vpop.eup %1397 }
 0x73f   :  { %469 = vrot.lane.b32.xlu1 %v1398_v24, %s1490_s1 }
 0x7b1   :  { %v470_v26 = vpop.permute.xlu1 %469 }
 0x7b2   :  { %v472_v27 = vmul.f32 %v1396_v17, %v470_v26  ;;  %v702_v17 = vld [vmem:[#allocation2 + $0x14] sm:$0xf] }
 0x7b4   :  { %v479_v28 = vsel %vm478_vm8, %v472_v27, %v369_v63 }
 0x7b5   :  { %484 = vrot.lane.b32.xlu1 %v479_v28, %s1491_s4 }
 0x827   :  { %v485_v29 = vpop.permute.xlu1 %484 }
 0x828   :  { %1307 = vmatmul.mubr.msk.f32.vlgmr.msra.gmra.mxu0 %vm154_vm4, %v485_v29 }
 0x829   :  { %1321 = vmatpush3.msra.mxu0 %v1557_v3  ;;  %1328 = vmatprep.mubr.msk.f32.mxu0 %vm1488_vm1, %v1487_v5 }
 0x82a   :  { %1322 = vmatprep.subr.mxu0 %v1487_v5 }
 0x82b   :  { %1323 = vmatpush3.msra.mxu0 %v1566_v6 }
 0x82c   :  { %1324 = vmatprep.subr.mxu0 %v1487_v5 }
 0x82d   :  { %1325 = vmatpush3.msra.mxu0 %v1573_v7 }
 0x82e   :  { %1326 = vmatprep.subr.mxu0 %v1487_v5 }
 0x82f   :  { %1327 = vmatpush3.msra.mxu0 %v1581_v8 }
 0x830   :  { %1342 = vmatprep.subr.mxu0 %v1487_v5 }
 0x8e8   :  { %v554_v31 = vpop.f32.mrf.mxu0 }
 0x8e9   :  { %v558_v32 = vadd.f32 %v554_v31, %v482_v30 }
 0x8ea   :  { %v1308_v33 = vpop.f32.mrf.mxu0 }
 0x8eb   :  { %1399 = vtanh.f32 %v558_v32  ;;  %v1193_v36 = vmul.f32 -1.442695, %v558_v32 }
 0x8ed   :  { %1401 = vpow2.f32 %v1193_v36 }
 0x8f8   :  { %v1400_v34 = vpop.eup %1399 }
 0x8f9   :  { %568 = vrot.lane.b32.xlu0 %v1400_v34, %s1490_s1 }
 0x8fa   :  { %v1402_v37 = vpop.eup %1401 }
 0x8fb   :  { %v562_v38 = vadd.f32 1.0, %v1402_v37 }
 0x8fd   :  { %586 = vperm.xlu0 %1374, %v584_v35   ;;  %1403 = vrcp.f32 %v562_v38  ;;  %v812_v35 = vld [vmem:[#allocation2 + $0x18] sm:$0xf] }
 0x90a   :  { %v1404_v39 = vpop.eup %1403 }
 0x90b   :  { %v566_v43 = vmul.f32 %v1404_v39, %v480_v42 }
 0x96b   :  { %v569_v40 = vpop.permute.xlu0 %568 }
 0x96c   :  { %v571_v41 = vmul.f32 %v1404_v39, %v569_v40  ;;  %v914_v40 = vsel %vm913_vm15, 1, %v1489_v10 }
 0x96e   :  { %573 = vrot.lane.b32.xlu1 %v571_v41, %s1491_s4 }
 0x978   :  { %v587_v47 = vpop.permute.xlu0 %586 }
 0x979   :  { %vm588_vm10 = vcmp.eq.s32.totalorder %v587_v47, 1 }
 0x9e0   :  { %v574_v44 = vpop.permute.xlu1 %573 }
 0x9e1   :  { %v576_v45 = vadd.f32 %v574_v44, %v566_v43 }
 0x9e3   :  { %1405 = vtanh.f32 %v576_v45  ;;  %v590_v0 = vsel %vm588_vm10, %v576_v45, %v480_v42 }
 0x9f0   :  { %v1406_v46 = vpop.eup %1405 }
 0x9f1   :  { %579 = vrot.lane.b32.xlu1 %v1406_v46, %s1490_s1 }
 0xa63   :  { %v580_v48 = vpop.permute.xlu1 %579 }
 0xa64   :  { %v582_v49 = vmul.f32 %v1404_v39, %v580_v48 }
 0xa66   :  { %v589_v50 = vsel %vm588_vm10, %v582_v49, %v479_v28 }
 0xa67   :  { %594 = vrot.lane.b32.xlu0 %v589_v50, %s1491_s4 }
 0xad9   :  { %v595_v51 = vpop.permute.xlu0 %594 }
 0xada   :  { %1318 = vmatmul.mubr.msk.f32.vlgmr.msra.gmra.mxu1 %vm154_vm4, %v595_v51 }
 0xadb   :  { %1332 = vmatpush3.msra.mxu1 %v1557_v3  ;;  %1339 = vmatprep.mubr.msk.f32.mxu1 %vm1488_vm1, %v1487_v5 }
 0xadc   :  { %1333 = vmatprep.subr.mxu1 %v1487_v5 }
 0xadd   :  { %1334 = vmatpush3.msra.mxu1 %v1566_v6 }
 0xade   :  { %1335 = vmatprep.subr.mxu1 %v1487_v5 }
 0xadf   :  { %1336 = vmatpush3.msra.mxu1 %v1573_v7 }
 0xae0   :  { %1337 = vmatprep.subr.mxu1 %v1487_v5 }
 0xae1   :  { %1338 = vmatpush3.msra.mxu1 %v1581_v8 }
 0xae2   :  { %1353 = vmatprep.subr.mxu1 %v1487_v5 }
 0xb9a   :  { %v664_v53 = vpop.f32.mrf.mxu1 }
 0xb9b   :  { %v668_v54 = vadd.f32 %v664_v53, %v592_v52 }
 0xb9c   :  { %v1319_v55 = vpop.f32.mrf.mxu1 }
 0xb9d   :  { %1407 = vtanh.f32 %v668_v54  ;;  %v1195_v58 = vmul.f32 -1.442695, %v668_v54 }
 0xb9f   :  { %1409 = vpow2.f32 %v1195_v58 }
 0xbaa   :  { %v1408_v56 = vpop.eup %1407 }
 0xbab   :  { %678 = vrot.lane.b32.xlu1 %v1408_v56, %s1490_s1 }
 0xbac   :  { %v1410_v59 = vpop.eup %1409 }
 0xbad   :  { %v672_v60 = vadd.f32 1.0, %v1410_v59 }
 0xbaf   :  { %696 = vperm.xlu1 %1373, %v694_v57   ;;  %1411 = vrcp.f32 %v672_v60  ;;  %v922_v57 = vld [vmem:[#allocation2 + $0x1c] sm:$0xf] }
 0xbbc   :  { %v1412_v61 = vpop.eup %1411 }
 0xbbd   :  { %v676_v1 = vmul.f32 %v1412_v61, %v590_v0 }
 0xc1d   :  { %v679_v62 = vpop.permute.xlu1 %678 }
 0xc1e   :  { %v681_v63 = vmul.f32 %v1412_v61, %v679_v62 }
 0xc20   :  { %683 = vrot.lane.b32.xlu0 %v681_v63, %s1491_s4 }
 0xc2a   :  { %v697_v12 = vpop.permute.xlu1 %696 }
 0xc2b   :  { %vm698_vm12 = vcmp.eq.s32.totalorder %v697_v12, 1 }
 0xc92   :  { %v684_v2 = vpop.permute.xlu0 %683 }
 0xc93   :  { %v686_v4 = vadd.f32 %v684_v2, %v676_v1 }
 0xc95   :  { %1413 = vtanh.f32 %v686_v4  ;;  %v700_v25 = vsel %vm698_vm12, %v686_v4, %v590_v0 }
 0xca2   :  { %v1414_v11 = vpop.eup %1413 }
 0xca3   :  { %689 = vrot.lane.b32.xlu0 %v1414_v11, %s1490_s1 }
 0xd15   :  { %v690_v13 = vpop.permute.xlu0 %689 }
 0xd16   :  { %v692_v14 = vmul.f32 %v1412_v61, %v690_v13 }
 0xd18   :  { %v699_v15 = vsel %vm698_vm12, %v692_v14, %v589_v50 }
 0xd19   :  { %704 = vrot.lane.b32.xlu1 %v699_v15, %s1491_s4 }
 0xd8b   :  { %v705_v16 = vpop.permute.xlu1 %704 }
 0xd8c   :  { %1329 = vmatmul.mubr.msk.f32.vlgmr.msra.gmra.mxu0 %vm154_vm4, %v705_v16  ;;  %v1037_v16 = vld [vmem:[%s1785_s5 + $0x8] sm:$0xff] }
 0xd8d   :  { %1343 = vmatpush3.msra.mxu0 %v1557_v3  ;;  %1350 = vmatprep.mubr.msk.f32.mxu0 %vm1488_vm1, %v1487_v5 }
 0xd8e   :  { %1344 = vmatprep.subr.mxu0 %v1487_v5 }
 0xd8f   :  { %1345 = vmatpush3.msra.mxu0 %v1566_v6  ;;  %v804_v6 = vsel %vm803_vm13, 1, %v1489_v10 }
 0xd90   :  { %1346 = vmatprep.subr.mxu0 %v1487_v5 }
 0xd91   :  { %1347 = vmatpush3.msra.mxu0 %v1573_v7 }
 0xd92   :  { %1348 = vmatprep.subr.mxu0 %v1487_v5 }
 0xd93   :  { %1349 = vmatpush3.msra.mxu0 %v1581_v8 }
 0xe4c   :  { %v774_v18 = vpop.f32.mrf.mxu0 }
 0xe4d   :  { %v778_v19 = vadd.f32 %v774_v18, %v702_v17  ;;  %v1036_v17 = vld [vmem:[%s1785_s5] sm:$0xff] }
 0xe4e   :  { %v1330_v20 = vpop.f32.mrf.mxu0 }
 0xe4f   :  { %1415 = vtanh.f32 %v778_v19  ;;  %v1197_v21 = vmul.f32 -1.442695, %v778_v19 }
 0xe51   :  { %1417 = vpow2.f32 %v1197_v21 }
 0xe5c   :  { %v1416_v3 = vpop.eup %1415 }
 0xe5d   :  { %788 = vrot.lane.b32.xlu0 %v1416_v3, %s1490_s1 }
 0xe5e   :  { %v1418_v7 = vpop.eup %1417 }
 0xe5f   :  { %v782_v22 = vadd.f32 1.0, %v1418_v7 }
 0xe61   :  { %806 = vperm.xlu0 %1374, %v804_v6   ;;  %1419 = vrcp.f32 %v782_v22 }
 0xe6e   :  { %v1420_v23 = vpop.eup %1419 }
 0xe6f   :  { %v786_v26 = vmul.f32 %v1420_v23, %v700_v25 }
 0xecf   :  { %v789_v8 = vpop.permute.xlu0 %788 }
 0xed0   :  { %v791_v24 = vmul.f32 %v1420_v23, %v789_v8 }
 0xed2   :  { %793 = vrot.lane.b32.xlu1 %v791_v24, %s1491_s4 }
 0xedc   :  { %v807_v30 = vpop.permute.xlu0 %806 }
 0xedd   :  { %vm808_vm14 = vcmp.eq.s32.totalorder %v807_v30, 1 }
 0xf44   :  { %v794_v27 = vpop.permute.xlu1 %793 }
 0xf45   :  { %v796_v28 = vadd.f32 %v794_v27, %v786_v26 }
 0xf47   :  { %1421 = vtanh.f32 %v796_v28  ;;  %v810_v47 = vsel %vm808_vm14, %v796_v28, %v700_v25 }
 0xf54   :  { %v1422_v29 = vpop.eup %1421 }
 0xf55   :  { %799 = vrot.lane.b32.xlu1 %v1422_v29, %s1490_s1 }
 0xfc7   :  { %v800_v31 = vpop.permute.xlu1 %799 }
 0xfc8   :  { %v802_v32 = vmul.f32 %v1420_v23, %v800_v31 }
 0xfca   :  { %v809_v33 = vsel %vm808_vm14, %v802_v32, %v699_v15  ;;  %v1038_v15 = vld [vmem:[%s1785_s5 + $0x10] sm:$0xff]  ;;  %v1132_v32 = vld [vmem:[%s1787_s7] sm:$0xf] }
 0xfcb   :  { %814 = vrot.lane.b32.xlu0 %v809_v33, %s1491_s4 }
0x103d   :  { %v815_v34 = vpop.permute.xlu0 %814 }
0x103e   :  { %1340 = vmatmul.mubr.msk.f32.vlgmr.msra.gmra.mxu1 %vm154_vm4, %v815_v34 }
0x103f   :  { %1361 = vmatprep.mubr.msk.f32.mxu1 %vm1488_vm1, %v1487_v5  ;;  %vm1023_vm1 = vcmp.gt.s32.totalorder %v1612_v9, 7 }
0x1040   :  { %v1024_v62 = vsel %vm1023_vm1, 1, %v1489_v10  ;;  %v1039_v10 = vld [vmem:[%s1785_s5 + $0x18] sm:$0xff] }
0x1041   :  { %1354 = vmatpush3.msra.mxu1 %v1039_v10 }
0x1042   :  { %1355 = vmatprep.subr.mxu1 %v1487_v5 }
0x1043   :  { %1356 = vmatpush3.msra.mxu1 %v1038_v15 }
0x1044   :  { %1357 = vmatprep.subr.mxu1 %v1487_v5 }
0x1045   :  { %1358 = vmatpush3.msra.mxu1 %v1037_v16 }
0x1046   :  { %1359 = vmatprep.subr.mxu1 %v1487_v5  ;;  %v1202_v5 = vld [vmem:[%s1786_s6] ss:$0 sm:$0xff] }
0x1047   :  { %1360 = vmatpush3.msra.mxu1 %v1036_v17 }
0x10fe   :  { %v884_v36 = vpop.f32.mrf.mxu1 }
0x10ff   :  { %v888_v37 = vadd.f32 %v884_v36, %v812_v35 }
0x1100   :  { %v1341_v38 = vpop.f32.mrf.mxu1 }
0x1101   :  { %1423 = vtanh.f32 %v888_v37  ;;  %v1199_v41 = vmul.f32 -1.442695, %v888_v37 }
0x1103   :  { %1425 = vpow2.f32 %v1199_v41 }
0x110e   :  { %v1424_v39 = vpop.eup %1423 }
0x110f   :  { %898 = vrot.lane.b32.xlu1 %v1424_v39, %s1490_s1 }
0x1110   :  { %v1426_v42 = vpop.eup %1425 }
0x1111   :  { %v892_v43 = vadd.f32 1.0, %v1426_v42 }
0x1113   :  { %916 = vperm.xlu1 %1373, %v914_v40   ;;  %1427 = vrcp.f32 %v892_v43 }
0x1120   :  { %v1428_v44 = vpop.eup %1427 }
0x1121   :  { %v896_v48 = vmul.f32 %v1428_v44, %v810_v47 }
0x1181   :  { %v899_v45 = vpop.permute.xlu1 %898 }
0x1182   :  { %v901_v46 = vmul.f32 %v1428_v44, %v899_v45 }
0x1184   :  { %903 = vrot.lane.b32.xlu0 %v901_v46, %s1491_s4 }
0x118e   :  { %v917_v52 = vpop.permute.xlu1 %916 }
0x118f   :  { %vm918_vm0 = vcmp.eq.s32.totalorder %v917_v52, 1 }
0x11f6   :  { %v904_v49 = vpop.permute.xlu0 %903 }
0x11f7   :  { %v906_v50 = vadd.f32 %v904_v49, %v896_v48 }
0x11f9   :  { %1429 = vtanh.f32 %v906_v50  ;;  %v920_v12 = vsel %vm918_vm0, %v906_v50, %v810_v47 }
0x1206   :  { %v1430_v51 = vpop.eup %1429 }
0x1207   :  { %909 = vrot.lane.b32.xlu0 %v1430_v51, %s1490_s1 }
0x1279   :  { %v910_v53 = vpop.permute.xlu0 %909 }
0x127a   :  { %v912_v54 = vmul.f32 %v1428_v44, %v910_v53 }
0x127c   :  { %v919_v55 = vsel %vm918_vm0, %v912_v54, %v809_v33 }
0x127d   :  { %924 = vrot.lane.b32.xlu1 %v919_v55, %s1491_s4 }
0x12ef   :  { %v925_v56 = vpop.permute.xlu1 %924 }
0x12f0   :  { %1351 = vmatmul.mubr.msk.f32.vlgmr.msra.gmra.mxu0 %vm154_vm4, %v925_v56 }
0x13b0   :  { %v994_v58 = vpop.f32.mrf.mxu0 }
0x13b1   :  { %v998_v59 = vadd.f32 %v994_v58, %v922_v57 }
0x13b2   :  { %v1352_v60 = vpop.f32.mrf.mxu0 }
0x13b3   :  { %1431 = vtanh.f32 %v998_v59  ;;  %v1201_v63 = vmul.f32 -1.442695, %v998_v59 }
0x13b5   :  { %1433 = vpow2.f32 %v1201_v63 }
0x13c0   :  { %v1432_v61 = vpop.eup %1431 }
0x13c1   :  { %1008 = vrot.lane.b32.xlu0 %v1432_v61, %s1490_s1 }
0x13c2   :  { %v1434_v0 = vpop.eup %1433 }
0x13c3   :  { %v1002_v1 = vadd.f32 1.0, %v1434_v0 }
0x13c5   :  { %1026 = vperm.xlu0 %1374, %v1024_v62   ;;  %1435 = vrcp.f32 %v1002_v1 }
0x13d2   :  { %v1436_v2 = vpop.eup %1435 }
0x13d3   :  { %v1006_v13 = vmul.f32 %v1436_v2, %v920_v12 }
0x1433   :  { %v1009_v4 = vpop.permute.xlu0 %1008 }
0x1434   :  { %v1011_v11 = vmul.f32 %v1436_v2, %v1009_v4 }
0x1436   :  { %1013 = vrot.lane.b32.xlu1 %v1011_v11, %s1491_s4 }
0x1440   :  { %v1027_v19 = vpop.permute.xlu0 %1026 }
0x1441   :  { %vm1028_vm2 = vcmp.eq.s32.totalorder %v1027_v19, 1 }
0x14a8   :  { %v1014_v9 = vpop.permute.xlu1 %1013 }
0x14a9   :  { %v1016_v14 = vadd.f32 %v1014_v9, %v1006_v13 }
0x14ab   :  { %1437 = vtanh.f32 %v1016_v14 }
0x14b8   :  { %v1438_v18 = vpop.eup %1437 }
0x14b9   :  { %1019 = vrot.lane.b32.xlu1 %v1438_v18, %s1490_s1 }
0x152b   :  { %v1020_v20 = vpop.permute.xlu1 %1019 }
0x152c   :  { %v1022_v3 = vmul.f32 %v1436_v2, %v1020_v20 }
0x152e   :  { %v1029_v6 = vsel %vm1028_vm2, %v1022_v3, %v919_v55 }
0x152f   :  { %1031 = vrot.lane.b32.xlu0 %v1029_v6, %s1491_s4 }
0x15a1   :  { %v1032_v21 = vpop.permute.xlu0 %1031 }
0x15a2   :  { %1362 = vmatmul.mubr.msk.f32.vlgmr.msra.gmra.mxu1 %vm154_vm4, %v1032_v21  ;;  %1035 = vst.msk [vmem:[#allocation5] sm:$0xf] %vm1034_vm3, %v1032_v21  ;;  %vm1137_vm4 = vcmask 3072  }
0x1662   :  { %v1115_v7 = vpop.f32.mrf.mxu1 }
0x1663   :  { %v1116_v22 = vadd.f32 %v1202_v5, %v1115_v7 }
0x1664   :  { %v1363_v23 = vpop.f32.mrf.mxu1 }
0x1665   :  { %v1120_v8 = vsel %vm1119_vm5, %v1116_v22, -inf }
0x1666   :  { %1121 = vmax.xlane.f32.xlu1 %v1120_v8 }
0x16ef   :  { %v1122_v24 = vpop.xlane.xlu1 %1121 }
0x16f0   :  { %v1123_v25 = vsub.f32 %v1116_v22, %v1122_v24 }
0x16f2   :  { %v1124_v26 = vmul.f32 1.442695, %v1123_v25 }
0x16f4   :  { %1439 = vpow2.f32 %v1124_v26 }
0x1701   :  { %v1440_v27 = vpop.eup %1439 }
0x1702   :  { %v1126_v28 = vsel %vm1119_vm5, %v1440_v27, 0.0 }
0x1703   :  { %1127 = vadd.xlane.f32.xlu0 %v1126_v28 }
0x178c   :  { %v1128_v29 = vpop.xlane.xlu0 %1127 }
0x178d   :  { %1441 = vlog2.f32 %v1128_v29 }
0x179a   :  { %v1442_v30 = vpop.eup %1441 }
0x179b   :  { %v1130_v31 = vmul.f32 0.6931472, %v1442_v30 }
0x179d   :  { %v1131_v33 = vsub.f32 %v1123_v25, %v1130_v31 }
0x179f   :  { %v1133_v34 = vmul.f32 %v1132_v32, %v1131_v33 }
0x17a1   :  { %v1134_v35 = vsel %vm1119_vm5, %v1133_v34, 0.0 }
0x17a2   :  { %1135 = vadd.xlane.f32.xlu0 %v1134_v35 }
0x182b   :  { %v1136_v36 = vpop.xlane.xlu0 %1135 }
0x182c   :  { %v1138_v37 = vsel %vm1137_vm4, %v1136_v36, 0.0 }
0x182d   :  { %1139 = vadd.xlane.f32.xlu1 %v1138_v37 }
0x182e   :  { %1454 = shalt.err (!%p1451_p4)
}
0x182f   :  { %1173 = dma.vmem_to_hbm [thread:$0]  %s1171_s19, 64, %s1789_s9, [#allocation6]   ;;  %vm1152_vm6 = vcmask 0  }
0x1830   :  { %s1493_s23 = smov [#allocation3]  }
0x1831   :  { %s1160_s3 = sshll.u32 %s1493_s23, 4  ;;  %s1161_s3 = int_to_ptr.vmem [resolvable:$true] %s1160_s3 }
0x1832   :  { %s1463_s24 = scalar_lea.vmem %s1161_s3, 16  ;;  %s1467_s9 = scalar_lea.vmem %s1161_s3, 32 }
0x1833   :  { %p1464_p5 = scmp.ne.s32.totalorder %s1161_s3, %s1463_s24  ;;  %p1468_p6 = scmp.lt.s32.totalorder %s1161_s3, %s1161_s3 }
0x1834   :  { %p1469_p7 = scmp.lt.s32.totalorder %s1467_s9, %s1463_s24 }
0x1836   :  { %p1470_p8 = por %p1469_p7, %p1468_p6 }
0x1838   :  { %p1471_p9 = pnand %p1470_p8, %p1464_p5 }
0x18b6   :  { %v1140_v38 = vpop.xlane.xlu1 %1139 }
0x18b7   :  { %v1141_v39 = vrot.slane %v1140_v38, 4 }
0x18b9   :  { %v1142_v40 = vadd.f32 %v1141_v39, %v1140_v38 }
0x18bb   :  { %v1143_v41 = vrot.slane %v1142_v40, 2 }
0x18bd   :  { %v1144_v42 = vadd.f32 %v1143_v41, %v1142_v40 }
0x18bf   :  { %v1145_v43 = vrot.slane %v1144_v42, 1 }
0x18c1   :  { %v1146_v44 = vadd.f32 %v1145_v43, %v1144_v42 }
0x18c3   :  { %1364 = vpush %v1146_v44 }
0x18f4   :  { %s1365_s22 = spop %1364 }
0x18f5   :  { %v1148_v45 = vstv %s1365_s22 }
0x18f6   :  { %v1150_v46 = vmul.f32 0.25, %v1148_v45 }
0x18f8   :  { %v1151_v47 = vsub.f32 0.0, %v1150_v46 }
0x18fa   :  { %1153 = vst.msk [vmem:[#allocation3] sm:$0x1] %vm1152_vm6, %v1151_v47 }
0x18fb   :  { %1474 = shalt.err (!%p1471_p9)
}
0x18fc   :  { %1163 = dma.vmem_to_hbm [thread:$0]  %s1161_s3, 16, %s1788_s8, [#allocation4]  }
0x18fd   :  { %1483 = dma.done.wait [#allocation4], 16  }
0x18fe   :  { %1484 = vsyncadd [#allocation4], 4294967280 }
0x18ff   :  { %1485 = dma.done.wait [#allocation6], 64  }
0x1900   :  { %1486 = vsyncadd [#allocation6], 4294967232 }
0x1901   :  { %1180 = vsyncpa [#allocation4], 1 }
0x1902   :  { %1181 = vsyncpa [#allocation6], 1 }

</bundles_post_ra>
